<compile_context>
chip_gen: v7x
topology: tpu7x:2x2x1
jax: 0.10.0
libtpu: 0.0.40
codegen_flags: <defaults>
</compile_context>

<pallas_src>
import math

import numpy as np
import jax
import jax.numpy as jnp
from jax import lax
from jax.experimental import pallas as pl
from jax.experimental.pallas import tpu as pltpu  # noqa: F401  (TPU backend assumed)

# ---------------------------------------------------------------------------
# Model hyper-parameters (small, consistent with the module's constructor)
# ---------------------------------------------------------------------------
BATCH = 2
SEQ = 8
EMBED = 32
N_HEADS = 4
FF_DIM = 64
HEAD_DIM = EMBED // N_HEADS
LN_EPS = 1e-5
NEG_INF = -1e30

BS = BATCH * SEQ                 # 16 rows for every linear layer
R = N_HEADS * BS                 # 64 row-stacked (head, batch, query) rows

# ---------------------------------------------------------------------------
# Packed parameter slab layout: ONE lane-dense (SLAB_ROWS, 128) f32 array.
#   rows   0: 32  | cols  0: 96  wqkv (E, 3E)   | cols 96:128  wo (E, E)
#   rows  32: 64  | cols  0: 64  w1   (E, FF)   | cols 64:128  zero
#   row   64      | cols  0: 96  bqkv (1, 3E)   | cols 96:128  bo (1, E)
#   row   65      | cols  0: 32  ln1_g | 32:64 ln1_b | 64:128 b1 (1, FF)
#   row   66      | cols  0: 32  b2    | 32:64 ln2_g | 64:96  ln2_b
#   rows  67: 72  zero padding (8-row alignment)
#   rows  72:136  | cols  0: 32  head_mask (R,E) | 32:48 bias (R,BS) | 48:80 w2 (FF,E)
# ---------------------------------------------------------------------------
SLAB_ROWS = 136
SLAB_COLS = 128


def _layer_norm(v, gamma, beta):
    """LayerNorm over the last axis (biased variance, eps=1e-5), PyTorch-style."""
    mu = jnp.mean(v, axis=-1, keepdims=True)
    var = jnp.mean((v - mu) * (v - mu), axis=-1, keepdims=True)
    return (v - mu) * lax.rsqrt(var + LN_EPS) * gamma + beta


def transformer_block_kernel(x_ref, p_ref, o_ref):
    E, H, Dh, FF = EMBED, N_HEADS, HEAD_DIM, FF_DIM

    x = x_ref[...]                                    # (16, 32) — all linears see 2-D

    # -- static slices of the single packed slab (views; one DMA brought it all in)
    wqkv = p_ref[0:32, 0:96]                          # (E, 3E), q-scale folded in
    wo = p_ref[0:32, 96:128]                          # (E, E)
    w1 = p_ref[32:64, 0:64]                           # (E, FF)
    w2 = p_ref[72:136, 48:80]                         # (FF, E)
    bqkv = p_ref[64:65, 0:96]
    bo = p_ref[64:65, 96:128]
    g1 = p_ref[65:66, 0:32]
    be1 = p_ref[65:66, 32:64]
    b1 = p_ref[65:66, 64:128]
    b2 = p_ref[66:67, 0:32]
    g2 = p_ref[66:67, 32:64]
    be2 = p_ref[66:67, 64:96]
    head_mask = p_ref[72:136, 0:32]                   # (R, E)  compile-time constant
    bias = p_ref[72:136, 32:48]                       # (R, BS) batch + causal, -1e30

    # ---- fused QKV projection: one (BS,E) x (E,3E) MXU matmul -----------------
    qkv = jnp.dot(x, wqkv, preferred_element_type=jnp.float32) + bqkv
    q = qkv[:, :E]                                    # 1/sqrt(Dh) already folded in
    k = qkv[:, E:2 * E]
    v = qkv[:, 2 * E:]

    # ---- all heads & batches of attention in TWO 2-D matmuls ------------------
    # Row-stack q in (head, batch, seq) order: a contiguous sublane stack (no
    # broadcast+reshape relayout).  head_mask keeps only head-h columns per row
    # block, so q_st @ k^T yields every per-head score matrix at once; the
    # additive bias removes cross-batch and future-key (causal) terms.
    q_st = jnp.concatenate([q] * H, axis=0) * head_mask          # (R, E)

    # NOTE: contraction is on k's minor dim (MXU consumes k transposed in-flight);
    # negligible at E=32 — keep k in (E, keys) layout if E / S ever grow.
    s = jnp.einsum("re,ce->rc", q_st, k,
                   preferred_element_type=jnp.float32) + bias    # (R, BS)
    s = s - jnp.max(s, axis=-1, keepdims=True)
    p = jnp.exp(s)
    p = p * pl.reciprocal(jnp.sum(p, axis=-1, keepdims=True), approx=True)

    ctx = jnp.dot(p, v, preferred_element_type=jnp.float32) * head_mask   # (R, E)
    # merge heads: four aligned static sublane-slice adds (no 4-D reshape/reduce)
    ctx = ctx[0:BS] + ctx[BS:2 * BS] + ctx[2 * BS:3 * BS] + ctx[3 * BS:4 * BS]

    attn = jnp.dot(ctx, wo, preferred_element_type=jnp.float32) + bo
    out1 = _layer_norm(x + attn, g1, be1)             # dropout1 -> identity (eval)

    # ---- feed-forward ----------------------------------------------------------
    hdn = jnp.maximum(
        jnp.dot(out1, w1, preferred_element_type=jnp.float32) + b1, 0.0)
    ffn = jnp.dot(hdn, w2, preferred_element_type=jnp.float32) + b2

    # dropout2 -> identity (eval mode)
    o_ref[...] = _layer_norm(out1 + ffn, g2, be2)


def transformer_block(x, packed):
    """x: (B, S, E) float32. packed: dict from pack_params() (single weight slab)."""
    B, S, E = x.shape
    assert (S, E) == (SEQ, EMBED) and B == BATCH
    x2 = x.reshape(B * S, E)                          # free XLA reshape outside kernel
    out = pl.pallas_call(
        transformer_block_kernel,
        out_shape=jax.ShapeDtypeStruct((B * S, E), jnp.float32),
        cost_estimate=pl.CostEstimate(
            flops=393_216, transcendentals=1_120, bytes_accessed=73_728),
    )(x2, packed["slab"])
    return out.reshape(B, S, E)


# ---------------------------------------------------------------------------
# Deterministic parameter init (shapes implied by nn.MultiheadAttention /
# nn.Linear / nn.LayerNorm in the PyTorch module), plus a one-time packing
# transform (QKV fusion + scale folding + single lane-dense slab + constant
# attention masks) for the kernel.
# ---------------------------------------------------------------------------
def init_params(key):
    ks = jax.random.split(key, 12)
    E, FF = EMBED, FF_DIM
    in_proj_w = 0.05 * jax.random.normal(ks[0], (3 * E, E), jnp.float32)   # (3E, E)
    in_proj_b = 0.02 * jax.random.normal(ks[1], (3 * E,), jnp.float32)
    out_proj_w = 0.05 * jax.random.normal(ks[2], (E, E), jnp.float32)      # (E, E)
    out_proj_b = 0.02 * jax.random.normal(ks[3], (E,), jnp.float32)
    w1 = 0.05 * jax.random.normal(ks[4], (FF, E), jnp.float32)             # Linear(E, FF)
    b1 = 0.02 * jax.random.normal(ks[5], (FF,), jnp.float32)
    w2 = 0.05 * jax.random.normal(ks[6], (E, FF), jnp.float32)             # Linear(FF, E)
    b2 = 0.02 * jax.random.normal(ks[7], (E,), jnp.float32)
    ln1_g = 1.0 + 0.1 * jax.random.normal(ks[8], (E,), jnp.float32)
    ln1_b = 0.1 * jax.random.normal(ks[9], (E,), jnp.float32)
    ln2_g = 1.0 + 0.1 * jax.random.normal(ks[10], (E,), jnp.float32)
    ln2_b = 0.1 * jax.random.normal(ks[11], (E,), jnp.float32)

    # Pre-transpose so the kernel / reference do x @ W; reshape 1-D params to (1, N).
    return {
        "wq": in_proj_w[:E].T, "wk": in_proj_w[E:2 * E].T, "wv": in_proj_w[2 * E:].T,
        "bq": in_proj_b[:E].reshape(1, E),
        "bk": in_proj_b[E:2 * E].reshape(1, E),
        "bv": in_proj_b[2 * E:].reshape(1, E),
        "wo": out_proj_w.T, "bo": out_proj_b.reshape(1, E),
        "ln1_g": ln1_g.reshape(1, E), "ln1_b": ln1_b.reshape(1, E),
        "w1": w1.T, "b1": b1.reshape(1, FF),
        "w2": w2.T, "b2": b2.reshape(1, E),
        "ln2_g": ln2_g.reshape(1, E), "ln2_b": ln2_b.reshape(1, E),
    }


def pack_params(p):
    """One-time transform: fuse QKV, fold attention scale, build ONE lane-dense slab
    that also carries the precomputed head-mask and batch+causal additive bias."""
    E, FF, H, Dh, S = EMBED, FF_DIM, N_HEADS, HEAD_DIM, SEQ
    scale = 1.0 / math.sqrt(Dh)
    slab = np.zeros((SLAB_ROWS, SLAB_COLS), np.float32)

    # weights
    slab[0:32, 0:32] = np.asarray(p["wq"]) * scale
    slab[0:32, 32:64] = np.asarray(p["wk"])
    slab[0:32, 64:96] = np.asarray(p["wv"])
    slab[0:32, 96:128] = np.asarray(p["wo"])
    slab[32:64, 0:64] = np.asarray(p["w1"])
    slab[72:136, 48:80] = np.asarray(p["w2"])

    # small bias / LayerNorm vectors
    slab[64, 0:32] = np.asarray(p["bq"]).reshape(-1) * scale
    slab[64, 32:64] = np.asarray(p["bk"]).reshape(-1)
    slab[64, 64:96] = np.asarray(p["bv"]).reshape(-1)
    slab[64, 96:128] = np.asarray(p["bo"]).reshape(-1)
    slab[65, 0:32] = np.asarray(p["ln1_g"]).reshape(-1)
    slab[65, 32:64] = np.asarray(p["ln1_b"]).reshape(-1)
    slab[65, 64:128] = np.asarray(p["b1"]).reshape(-1)
    slab[66, 0:32] = np.asarray(p["b2"]).reshape(-1)
    slab[66, 32:64] = np.asarray(p["ln2_g"]).reshape(-1)
    slab[66, 64:96] = np.asarray(p["ln2_b"]).reshape(-1)

    # constant attention masks, (head, batch, seq) row order
    r = np.arange(R)
    h_r = r // BS
    b_r = (r % BS) // S
    s_r = r % S
    c = np.arange(BS)
    b_c = c // S
    s_c = c % S
    head_mask = (h_r[:, None] == (np.arange(E) // Dh)[None, :]).astype(np.float32)
    bias = np.where((b_r[:, None] == b_c[None, :]) & (s_c[None, :] <= s_r[:, None]),
                    0.0, NEG_INF).astype(np.float32)
    slab[72:136, 0:32] = head_mask
    slab[72:136, 32:48] = bias

    return {"slab": jnp.asarray(slab)}


# ---------------------------------------------------------------------------
# Pure-JAX reference (uses the natural, un-fused parameters) for correctness.
# ---------------------------------------------------------------------------
def reference(x, p):
    def ln(v, g, b):
        mu = jnp.mean(v, axis=-1, keepdims=True)
        var = jnp.mean((v - mu) ** 2, axis=-1, keepdims=True)
        return (v - mu) / jnp.sqrt(var + LN_EPS) * g + b

    B, S, E = x.shape
    q = x @ p["wq"] + p["bq"]
    k = x @ p["wk"] + p["bk"]
    v = x @ p["wv"] + p["bv"]
    q = q.reshape(B, S, N_HEADS, HEAD_DIM).transpose(0, 2, 1, 3)
    k = k.reshape(B, S, N_HEADS, HEAD_DIM).transpose(0, 2, 1, 3)
    v = v.reshape(B, S, N_HEADS, HEAD_DIM).transpose(0, 2, 1, 3)
    scores = jnp.einsum("bhqd,bhkd->bhqk", q, k) / math.sqrt(HEAD_DIM)
    causal = jnp.where(
        jnp.arange(S)[None, :] > jnp.arange(S)[:, None], -jnp.inf, 0.0
    )
    scores = scores + causal
    attn = jax.nn.softmax(scores, axis=-1)
    ctx = jnp.einsum("bhqk,bhkd->bhqd", attn, v).transpose(0, 2, 1, 3).reshape(B, S, E)
    ctx = ctx @ p["wo"] + p["bo"]
    out1 = ln(x + ctx, p["ln1_g"], p["ln1_b"])
    ffn = jnp.maximum(out1 @ p["w1"] + p["b1"], 0.0) @ p["w2"] + p["b2"]
    return ln(out1 + ffn, p["ln2_g"], p["ln2_b"])


if __name__ == "__main__":
    key = jax.random.PRNGKey(0)
    k_x, k_p = jax.random.split(key)
    x = jax.random.normal(k_x, (BATCH, SEQ, EMBED), jnp.float32)
    params = init_params(k_p)
    packed = pack_params(params)          # one-time parameter transform

    out = jax.block_until_ready(transformer_block(x, packed))
    ref = reference(x, params)

    assert out.shape == (BATCH, SEQ, EMBED)
    # approx reciprocal in the softmax contributes ~1e-4 relative error to the
    # attention probabilities; end-to-end error stays well below this tolerance.
    assert jnp.allclose(out, ref, atol=2e-4, rtol=2e-4), (
        f"max abs err {jnp.max(jnp.abs(out - ref))}"
    )
    print("KERNEL_OK")
</pallas_src>

<mosaic_0001>
module attributes {stable_mosaic.version = 11 : i64} {
  func.func @transformer_block_kernel(%arg0: memref<16x32xf32, #tpu.memory_space<vmem>>, %arg1: memref<136x128xf32, #tpu.memory_space<vmem>>, %arg2: memref<16x32xf32, #tpu.memory_space<vmem>>) attributes {dimension_semantics = [], scalar_prefetch = 0 : i64, scratch_operands = 0 : i64, tpu.core_type = #tpu.core_type<tc>} {
    %c0 = arith.constant 0 : index
    %c0_0 = arith.constant 0 : index
    %0 = vector.load %arg0[%c0, %c0_0] : memref<16x32xf32, #tpu.memory_space<vmem>>, vector<16x32xf32>
    %c0_1 = arith.constant 0 : index
    %c0_2 = arith.constant 0 : index
    %1 = vector.load %arg1[%c0_1, %c0_2] : memref<136x128xf32, #tpu.memory_space<vmem>>, vector<32x96xf32>
    %c0_3 = arith.constant 0 : index
    %c96 = arith.constant 96 : index
    %2 = vector.load %arg1[%c0_3, %c96] : memref<136x128xf32, #tpu.memory_space<vmem>>, vector<32x32xf32>
    %c32 = arith.constant 32 : index
    %c0_4 = arith.constant 0 : index
    %3 = vector.load %arg1[%c32, %c0_4] : memref<136x128xf32, #tpu.memory_space<vmem>>, vector<32x64xf32>
    %c72 = arith.constant 72 : index
    %c48 = arith.constant 48 : index
    %4 = vector.load %arg1[%c72, %c48] : memref<136x128xf32, #tpu.memory_space<vmem>>, vector<64x32xf32>
    %c64 = arith.constant 64 : index
    %c0_5 = arith.constant 0 : index
    %5 = vector.load %arg1[%c64, %c0_5] : memref<136x128xf32, #tpu.memory_space<vmem>>, vector<1x96xf32>
    %c64_6 = arith.constant 64 : index
    %c96_7 = arith.constant 96 : index
    %6 = vector.load %arg1[%c64_6, %c96_7] : memref<136x128xf32, #tpu.memory_space<vmem>>, vector<1x32xf32>
    %c65 = arith.constant 65 : index
    %c0_8 = arith.constant 0 : index
    %7 = vector.load %arg1[%c65, %c0_8] : memref<136x128xf32, #tpu.memory_space<vmem>>, vector<1x32xf32>
    %c65_9 = arith.constant 65 : index
    %c32_10 = arith.constant 32 : index
    %8 = vector.load %arg1[%c65_9, %c32_10] : memref<136x128xf32, #tpu.memory_space<vmem>>, vector<1x32xf32>
    %c65_11 = arith.constant 65 : index
    %c64_12 = arith.constant 64 : index
    %9 = vector.load %arg1[%c65_11, %c64_12] : memref<136x128xf32, #tpu.memory_space<vmem>>, vector<1x64xf32>
    %c66 = arith.constant 66 : index
    %c0_13 = arith.constant 0 : index
    %10 = vector.load %arg1[%c66, %c0_13] : memref<136x128xf32, #tpu.memory_space<vmem>>, vector<1x32xf32>
    %c66_14 = arith.constant 66 : index
    %c32_15 = arith.constant 32 : index
    %11 = vector.load %arg1[%c66_14, %c32_15] : memref<136x128xf32, #tpu.memory_space<vmem>>, vector<1x32xf32>
    %c66_16 = arith.constant 66 : index
    %c64_17 = arith.constant 64 : index
    %12 = vector.load %arg1[%c66_16, %c64_17] : memref<136x128xf32, #tpu.memory_space<vmem>>, vector<1x32xf32>
    %c72_18 = arith.constant 72 : index
    %c0_19 = arith.constant 0 : index
    %13 = vector.load %arg1[%c72_18, %c0_19] : memref<136x128xf32, #tpu.memory_space<vmem>>, vector<64x32xf32>
    %c72_20 = arith.constant 72 : index
    %c32_21 = arith.constant 32 : index
    %14 = vector.load %arg1[%c72_20, %c32_21] : memref<136x128xf32, #tpu.memory_space<vmem>>, vector<64x16xf32>
    %cst = arith.constant dense<0.000000e+00> : vector<16x96xf32>
    %15 = tpu.matmul %0, %1, %cst {dimension_numbers = #tpu.dot_dimension_numbers<[1], [0], [0], [1], [0, 0, 1, 1], [], []>} : vector<16x32xf32>, vector<32x96xf32>, vector<16x96xf32> -> vector<16x96xf32>
    %16 = vector.broadcast %5 : vector<1x96xf32> to vector<16x96xf32>
    %17 = arith.addf %15, %16 : vector<16x96xf32>
    %18 = vector.extract_strided_slice %17 {offsets = [0, 0], sizes = [16, 32], strides = [1, 1]} : vector<16x96xf32> to vector<16x32xf32>
    %19 = vector.extract_strided_slice %17 {offsets = [0, 32], sizes = [16, 32], strides = [1, 1]} : vector<16x96xf32> to vector<16x32xf32>
    %20 = vector.extract_strided_slice %17 {offsets = [0, 64], sizes = [16, 32], strides = [1, 1]} : vector<16x96xf32> to vector<16x32xf32>
    %21 = tpu.concatenate %18, %18, %18, %18 in 0 : vector<16x32xf32>, vector<16x32xf32>, vector<16x32xf32>, vector<16x32xf32> -> vector<64x32xf32>
    %22 = arith.mulf %21, %13 : vector<64x32xf32>
    "tpu.trace_start"() <{level = 10 : i32, message = "re,ce->rc"}> : () -> ()
    %cst_22 = arith.constant dense<0.000000e+00> : vector<64x16xf32>
    %23 = tpu.matmul %22, %19, %cst_22 {dimension_numbers = #tpu.dot_dimension_numbers<[1], [1], [0], [0], [0, 0, 1, 0], [], []>} : vector<64x32xf32>, vector<16x32xf32>, vector<64x16xf32> -> vector<64x16xf32>
    "tpu.trace_stop"() : () -> ()
    %24 = arith.addf %23, %14 : vector<64x16xf32>
    %cst_23 = arith.constant dense<0xFF800000> : vector<64xf32>
    %25 = vector.multi_reduction <maximumf>, %24, %cst_23 [1] : vector<64x16xf32> to vector<64xf32>
    %26 = vector.shape_cast %25 : vector<64xf32> to vector<64x1xf32>
    %27 = vector.broadcast %26 : vector<64x1xf32> to vector<64x16xf32>
    %28 = arith.subf %24, %27 : vector<64x16xf32>
    %29 = math.exp %28 : vector<64x16xf32>
    %cst_24 = arith.constant dense<0.000000e+00> : vector<64xf32>
    %30 = vector.multi_reduction <add>, %29, %cst_24 [1] : vector<64x16xf32> to vector<64xf32>
    %31 = vector.shape_cast %30 : vector<64xf32> to vector<64x1xf32>
    %32 = tpu.reciprocal %31 {approx = true} : vector<64x1xf32> -> vector<64x1xf32>
    %33 = vector.broadcast %32 : vector<64x1xf32> to vector<64x16xf32>
    %34 = arith.mulf %29, %33 : vector<64x16xf32>
    %cst_25 = arith.constant dense<0.000000e+00> : vector<64x32xf32>
    %35 = tpu.matmul %34, %20, %cst_25 {dimension_numbers = #tpu.dot_dimension_numbers<[1], [0], [0], [1], [0, 0, 1, 1], [], []>} : vector<64x16xf32>, vector<16x32xf32>, vector<64x32xf32> -> vector<64x32xf32>
    %36 = arith.mulf %35, %13 : vector<64x32xf32>
    %37 = vector.extract_strided_slice %36 {offsets = [0, 0], sizes = [16, 32], strides = [1, 1]} : vector<64x32xf32> to vector<16x32xf32>
    %38 = vector.extract_strided_slice %36 {offsets = [16, 0], sizes = [16, 32], strides = [1, 1]} : vector<64x32xf32> to vector<16x32xf32>
    %39 = arith.addf %37, %38 : vector<16x32xf32>
    %40 = vector.extract_strided_slice %36 {offsets = [32, 0], sizes = [16, 32], strides = [1, 1]} : vector<64x32xf32> to vector<16x32xf32>
    %41 = arith.addf %39, %40 : vector<16x32xf32>
    %42 = vector.extract_strided_slice %36 {offsets = [48, 0], sizes = [16, 32], strides = [1, 1]} : vector<64x32xf32> to vector<16x32xf32>
    %43 = arith.addf %41, %42 : vector<16x32xf32>
    %cst_26 = arith.constant dense<0.000000e+00> : vector<16x32xf32>
    %44 = tpu.matmul %43, %2, %cst_26 {dimension_numbers = #tpu.dot_dimension_numbers<[1], [0], [0], [1], [0, 0, 1, 1], [], []>} : vector<16x32xf32>, vector<32x32xf32>, vector<16x32xf32> -> vector<16x32xf32>
    %45 = vector.broadcast %6 : vector<1x32xf32> to vector<16x32xf32>
    %46 = arith.addf %44, %45 : vector<16x32xf32>
    %47 = arith.addf %0, %46 : vector<16x32xf32>
    %cst_27 = arith.constant dense<0.000000e+00> : vector<16xf32>
    %48 = vector.multi_reduction <add>, %47, %cst_27 [1] : vector<16x32xf32> to vector<16xf32>
    %49 = vector.shape_cast %48 : vector<16xf32> to vector<16x1xf32>
    %cst_28 = arith.constant 3.200000e+01 : f32
    %50 = vector.broadcast %cst_28 : f32 to vector<16x1xf32>
    %51 = arith.divf %49, %50 : vector<16x1xf32>
    %52 = vector.broadcast %51 : vector<16x1xf32> to vector<16x32xf32>
    %53 = arith.subf %47, %52 : vector<16x32xf32>
    %54 = vector.broadcast %51 : vector<16x1xf32> to vector<16x32xf32>
    %55 = arith.subf %47, %54 : vector<16x32xf32>
    %56 = arith.mulf %53, %55 : vector<16x32xf32>
    %cst_29 = arith.constant dense<0.000000e+00> : vector<16xf32>
    %57 = vector.multi_reduction <add>, %56, %cst_29 [1] : vector<16x32xf32> to vector<16xf32>
    %58 = vector.shape_cast %57 : vector<16xf32> to vector<16x1xf32>
    %cst_30 = arith.constant 3.200000e+01 : f32
    %59 = vector.broadcast %cst_30 : f32 to vector<16x1xf32>
    %60 = arith.divf %58, %59 : vector<16x1xf32>
    %61 = vector.broadcast %51 : vector<16x1xf32> to vector<16x32xf32>
    %62 = arith.subf %47, %61 : vector<16x32xf32>
    %cst_31 = arith.constant 9.99999974E-6 : f32
    %63 = vector.broadcast %cst_31 : f32 to vector<16x1xf32>
    %64 = arith.addf %60, %63 : vector<16x1xf32>
    %65 = math.rsqrt %64 : vector<16x1xf32>
    %66 = vector.broadcast %65 : vector<16x1xf32> to vector<16x32xf32>
    %67 = arith.mulf %62, %66 : vector<16x32xf32>
    %68 = vector.broadcast %7 : vector<1x32xf32> to vector<16x32xf32>
    %69 = arith.mulf %67, %68 : vector<16x32xf32>
    %70 = vector.broadcast %8 : vector<1x32xf32> to vector<16x32xf32>
    %71 = arith.addf %69, %70 : vector<16x32xf32>
    %cst_32 = arith.constant dense<0.000000e+00> : vector<16x64xf32>
    %72 = tpu.matmul %71, %3, %cst_32 {dimension_numbers = #tpu.dot_dimension_numbers<[1], [0], [0], [1], [0, 0, 1, 1], [], []>} : vector<16x32xf32>, vector<32x64xf32>, vector<16x64xf32> -> vector<16x64xf32>
    %73 = vector.broadcast %9 : vector<1x64xf32> to vector<16x64xf32>
    %74 = arith.addf %72, %73 : vector<16x64xf32>
    %cst_33 = arith.constant 0.000000e+00 : f32
    %75 = vector.broadcast %cst_33 : f32 to vector<16x64xf32>
    %76 = arith.maximumf %74, %75 : vector<16x64xf32>
    %cst_34 = arith.constant dense<0.000000e+00> : vector<16x32xf32>
    %77 = tpu.matmul %76, %4, %cst_34 {dimension_numbers = #tpu.dot_dimension_numbers<[1], [0], [0], [1], [0, 0, 1, 1], [], []>} : vector<16x64xf32>, vector<64x32xf32>, vector<16x32xf32> -> vector<16x32xf32>
    %78 = vector.broadcast %10 : vector<1x32xf32> to vector<16x32xf32>
    %79 = arith.addf %77, %78 : vector<16x32xf32>
    %80 = arith.addf %71, %79 : vector<16x32xf32>
    %cst_35 = arith.constant dense<0.000000e+00> : vector<16xf32>
    %81 = vector.multi_reduction <add>, %80, %cst_35 [1] : vector<16x32xf32> to vector<16xf32>
    %82 = vector.shape_cast %81 : vector<16xf32> to vector<16x1xf32>
    %cst_36 = arith.constant 3.200000e+01 : f32
    %83 = vector.broadcast %cst_36 : f32 to vector<16x1xf32>
    %84 = arith.divf %82, %83 : vector<16x1xf32>
    %85 = vector.broadcast %84 : vector<16x1xf32> to vector<16x32xf32>
    %86 = arith.subf %80, %85 : vector<16x32xf32>
    %87 = vector.broadcast %84 : vector<16x1xf32> to vector<16x32xf32>
    %88 = arith.subf %80, %87 : vector<16x32xf32>
    %89 = arith.mulf %86, %88 : vector<16x32xf32>
    %cst_37 = arith.constant dense<0.000000e+00> : vector<16xf32>
    %90 = vector.multi_reduction <add>, %89, %cst_37 [1] : vector<16x32xf32> to vector<16xf32>
    %91 = vector.shape_cast %90 : vector<16xf32> to vector<16x1xf32>
    %cst_38 = arith.constant 3.200000e+01 : f32
    %92 = vector.broadcast %cst_38 : f32 to vector<16x1xf32>
    %93 = arith.divf %91, %92 : vector<16x1xf32>
    %94 = vector.broadcast %84 : vector<16x1xf32> to vector<16x32xf32>
    %95 = arith.subf %80, %94 : vector<16x32xf32>
    %cst_39 = arith.constant 9.99999974E-6 : f32
    %96 = vector.broadcast %cst_39 : f32 to vector<16x1xf32>
    %97 = arith.addf %93, %96 : vector<16x1xf32>
    %98 = math.rsqrt %97 : vector<16x1xf32>
    %99 = vector.broadcast %98 : vector<16x1xf32> to vector<16x32xf32>
    %100 = arith.mulf %95, %99 : vector<16x32xf32>
    %101 = vector.broadcast %11 : vector<1x32xf32> to vector<16x32xf32>
    %102 = arith.mulf %100, %101 : vector<16x32xf32>
    %103 = vector.broadcast %12 : vector<1x32xf32> to vector<16x32xf32>
    %104 = arith.addf %102, %103 : vector<16x32xf32>
    %c0_40 = arith.constant 0 : index
    %c0_41 = arith.constant 0 : index
    %105 = vector.load %arg2[%c0_40, %c0_41] : memref<16x32xf32, #tpu.memory_space<vmem>>, vector<16x32xf32>
    tpu.vector_store %arg2[%c0_40, %c0_41], %104 {strides = array<i32>} : memref<16x32xf32, #tpu.memory_space<vmem>>, vector<16x32xf32>,
    return
  }
}

</mosaic_0001>

<bundles_post_ra>
// kernel: tpu_custom_call.1
= control target key start
LH: loop header
LB: loop body
LE: loop exit
PB: predicated region body
PF: predicated region fallthrough
CT: control target
= control target key end

     0   :  { %7 = vsyncpa [#allocation3], 0  ;;  %s1552_s0 = inlined_call_operand.hbm [shape: f32[16,32], index: 0, kind: input, shape index: {}]   ;;  %s1553_s1 = inlined_call_operand.hbm [shape: f32[136,128], index: 1, kind: input, shape index: {}]   ;;  %s1554_s2 = inlined_call_operand.hbm [shape: f32[16,32], index: 2, kind: output, shape index: {}]  }
   0x1   :  { %8 = vsyncpa [#allocation6], 0 }
   0x2   :  { %9 = vsyncpa [#allocation4], 0  ;;  %s1335_s9 = smov [#allocation2]   ;;  %s1263_s13 = scalar_lea.hbm %s1552_s0, 256 }
   0x3   :  { %s15_s10 = sshll.u32 %s1335_s9, 4  ;;  %p1264_p0 = scmp.ne.s32.totalorder %s1552_s0, %s1263_s13  ;;  %s16_s10 = int_to_ptr.vmem [resolvable:$true] %s15_s10 }
   0x4   :  { %p1267_p1 = scmp.lt.u32.totalorder %s1263_s13, %s1552_s0 }
   0x6   :  { %p1269_p2 = pnand %p1267_p1, %p1264_p0 }
   0x8   :  { %1272 = shalt.err (!%p1269_p2)
}
   0x9   :  { %s1273_s18 = scalar_lea.vmem %s16_s10, 256  ;;  %p1278_p4 = scmp.lt.s32.totalorder %s16_s10, %s16_s10 }
   0xa   :  { %p1274_p3 = scmp.ne.s32.totalorder %s16_s10, %s1273_s18  ;;  %p1279_p5 = scmp.lt.s32.totalorder %s1273_s18, %s1273_s18 }
   0xc   :  { %p1280_p6 = por %p1279_p5, %p1278_p4 }
   0xe   :  { %p1281_p7 = pnand %p1280_p6, %p1274_p3 }
  0x10   :  { %1284 = shalt.err (!%p1281_p7)
}
  0x11   :  { %s1336_s19 = smov 128   ;;  %s1337_s20 = smov 8  }
  0x12   :  { %21 = dma.hbm_to_vmem [thread:$0]  %s1552_s0, 256, %s16_s10, [#allocation3], %s1336_s19, %s1336_s19, %s1337_s20  }
  0x13   :  { %s1338_s23 = smov [#allocation5]   ;;  %s1285_s27 = scalar_lea.hbm %s1553_s1, 2176 }
  0x14   :  { %s27_s24 = sshll.u32 %s1338_s23, 4  ;;  %p1286_p8 = scmp.ne.s32.totalorder %s1553_s1, %s1285_s27  ;;  %s28_s24 = int_to_ptr.vmem [resolvable:$true] %s27_s24 }
  0x15   :  { %p1289_p9 = scmp.lt.u32.totalorder %s1285_s27, %s1553_s1 }
  0x17   :  { %p1291_p10 = pnand %p1289_p9, %p1286_p8 }
  0x19   :  { %1294 = shalt.err (!%p1291_p10)
}
  0x1a   :  { %s1295_s4 = scalar_lea.vmem %s28_s24, 2176  ;;  %p1300_p12 = scmp.lt.s32.totalorder %s28_s24, %s28_s24 }
  0x1b   :  { %p1296_p11 = scmp.ne.s32.totalorder %s28_s24, %s1295_s4  ;;  %p1301_p13 = scmp.lt.s32.totalorder %s1295_s4, %s1295_s4 }
  0x1d   :  { %p1302_p0 = por %p1301_p13, %p1300_p12 }
  0x1f   :  { %p1303_p1 = pnand %p1302_p0, %p1296_p11 }
  0x21   :  { %1306 = shalt.err (!%p1303_p1)
}
  0x22   :  { %33 = dma.hbm_to_vmem [thread:$0]  %s1553_s1, 2176, %s28_s24, [#allocation6], %s1336_s19, %s1336_s19, %s1337_s20  }
  0x23   :  { %1329 = dma.done.wait [#allocation3], 256  }
  0x24   :  { %1330 = vsyncadd [#allocation3], 4294967040 }
  0x25   :  { %1331 = dma.done.wait [#allocation6], 2176  }
  0x26   :  { %1332 = vsyncadd [#allocation6], 4294965120  ;;  %vm65_vm0 = vcmask 261120   ;;  %v1389_v0 = vld [vmem:[#allocation5] sm:$0xff]  ;;  %v1391_v1 = vld [vmem:[#allocation5 + $0x8] sm:$0xff]  ;;  %s1339_s1 = smov 96  }
  0x27   :  { %v1393_v2 = vld [vmem:[#allocation5 + $0x10] sm:$0xff]  ;;  %v1193_v3 = vpack.i.bf16 %v1391_v1, %v1389_v0  ;;  %v1122_v4 = vpack.c.bf16 %v1391_v1, %v1389_v0  ;;  %v1399_v5 = vld [vmem:[#allocation5 + $0x18] sm:$0xff]  ;;  %v1419_v11 = vld [vmem:[#allocation5 + $0x68] sm:$0xff]  ;;  %vm326_vm2 = vcmask 130048   ;;  %s1340_s6 = smov 64   ;;  %s1341_s7 = smov 32  }
  0x28   :  { %v1401_v6 = vld [vmem:[#allocation2] sm:$0xff]  ;;  %v1126_v7 = vpack.c.bf16 %v1399_v5, %v1393_v2  ;;  %v1407_v8 = vld [vmem:[#allocation2 + $0x8] sm:$0xff]  ;;  %v1427_v13 = vld [vmem:[#allocation5 + $0x40] ss:$0 sm:$0xff]  ;;  %s1342_s8 = smov 80   ;;  %vm820_vm3 = vcmask 523264  }
  0x29   :  { %1046 = vmatprep.mubr.msk.f32.mxu0 %vm65_vm0, %v1401_v6  ;;  %1123 = vmatprep.subr.bf16.mxu0 %v1122_v4  ;;  %v1411_v9 = vld [vmem:[#allocation5 + $0x50] sm:$0xff]  ;;  %v1415_v10 = vld [vmem:[#allocation5 + $0x58] sm:$0xff]  ;;  %v1430_v17 = vld [vmem:[#allocation5 + $0x48] sm:$0xff]  ;;  %s1343_s9 = smov [#allocation7]  }
  0x2a   :  { %1125 = vmatpush3.bf16.msra.mxu0 %v1122_v4  ;;  %171 = vrot.lane.b32.xlu1 %v1411_v9, %s1339_s1  ;;  %v1423_v12 = vld [vmem:[#allocation5 + $0x78] sm:$0xff]  ;;  %v1443_v22 = vld [vmem:[#allocation5 + $0x60] sm:$0xff]  ;;  %v1447_v23 = vld [vmem:[#allocation5 + $0x70] sm:$0xff]  ;;  %s948_s10 = sshll.u32 %s1343_s9, 4  ;;  %s949_s10 = int_to_ptr.vmem [resolvable:$true] %s948_s10 }
  0x2b   :  { %1127 = vmatprep.subr.bf16.mxu0 %v1126_v7  ;;  %v1451_v24 = vld [vmem:[#allocation5 + $0x80] sm:$0xff]  ;;  %vm1131_vm1 = vmpackc.low %vm65_vm0, %vm65_vm0  ;;  %s1307_s11 = scalar_lea.vmem %s949_s10, 256  ;;  %p1312_p3 = scmp.lt.s32.totalorder %s949_s10, %s949_s10 }
  0x2c   :  { %p1308_p2 = scmp.ne.s32.totalorder %s949_s10, %s1307_s11  ;;  %p1313_p4 = scmp.lt.s32.totalorder %s1307_s11, %s1307_s11 }
  0x2e   :  { %1129 = vmatpush3.bf16.msra.mxu0 %v1126_v7  ;;  %173 = vrot.lane.b32.xlu1 %v1415_v10, %s1339_s1  ;;  %p1314_p5 = por %p1313_p4, %p1312_p3 }
  0x30   :  { %p1315_p6 = pnand %p1314_p5, %p1308_p2 }
  0x31   :  { %1047 = vmatmul.mubr.msk.f32.vlgmr.msra.gmra.mrb[0].mxu0 %vm65_vm0, %v1407_v8 }
  0x32   :  { %177 = vrot.lane.b32.xlu1 %v1419_v11, %s1339_s1 }
  0x36   :  { %181 = vrot.lane.b32.xlu1 %v1423_v12, %s1339_s1 }
  0x9c   :  { %v172_v35 = vpop.permute.xlu1 %171 }
  0xa0   :  { %v174_v37 = vpop.permute.xlu1 %173 }
  0xa4   :  { %v178_v45 = vpop.permute.xlu1 %177 }
  0xa8   :  { %v182_v57 = vpop.permute.xlu1 %181 }
 0x104   :  { %v1048_v14 = vpop.f32.mrb[0].mxu0 }
 0x105   :  { %v144_v15 = vadd.f32 %v1048_v14, %v1427_v13  ;;  %v138_v16 = vpop.f32.mrb[1].mxu0 }
 0x106   :  { %v139_v18 = vadd.f32 %v1427_v13, %v138_v16 }
 0x107   :  { %v148_v29 = vmul.f32 %v144_v15, %v1411_v9  ;;  %v150_v30 = vmul.f32 %v144_v15, %v1443_v22  ;;  %v152_v32 = vmul.f32 %v144_v15, %v1447_v23  ;;  %v154_v34 = vmul.f32 %v144_v15, %v1451_v24 }
 0x108   :  { %v1433_v19 = vpack.i.bf16 %v144_v15, %v139_v18  ;;  %v147_v20 = vmul.f32 %v139_v18, %v1430_v17  ;;  %v149_v21 = vmul.f32 %v139_v18, %v1415_v10  ;;  %v151_v31 = vmul.f32 %v139_v18, %v1419_v11 }
 0x109   :  { %v153_v33 = vmul.f32 %v139_v18, %v1423_v12 }
 0x10a   :  { %1184 = vrot.lane.b32.xlu0 %v1433_v19, %s1339_s1  ;;  %1053 = vmatprep.mubr.msk.f32.mxu0 %vm65_vm0, %v147_v20 }
 0x10b   :  { %1056 = vmatprep.mubr.msk.f32.mxu1 %vm65_vm0, %v149_v21 }
 0x10e   :  { %169 = vrot.lane.b32.xlu0 %v1430_v17, %s1339_s1 }
 0x112   :  { %175 = vrot.lane.b32.xlu0 %v1443_v22, %s1339_s1 }
 0x116   :  { %179 = vrot.lane.b32.xlu0 %v1447_v23, %s1339_s1 }
 0x11a   :  { %183 = vrot.lane.b32.xlu0 %v1451_v24, %s1339_s1 }
 0x17c   :  { %v1185_v25 = vpop.permute.xlu0 %1184 }
 0x17d   :  { %v1187_v26 = vunpack.i.h.bf16 %v1185_v25  ;;  %v1186_v27 = vunpack.i.l.bf16 %v1185_v25 }
 0x17f   :  { %v1130_v28 = vpack.c.bf16 %v1187_v26, %v1186_v27 }
 0x180   :  { %v170_v36 = vpop.permute.xlu0 %169 }
 0x181   :  { %1132 = vmatprep.subr.msk.bf16.mxu0 %vm1131_vm1, %v1130_v28  ;;  %1172 = vmatprep.subr.msk.bf16.mxu1 %vm1131_vm1, %v1130_v28 }
 0x182   :  { %1135 = vmatpush3.bf16.xpose.msk.msra.mxu0 %vm1131_vm1, %v1130_v28  ;;  %1173 = vmatpush3.bf16.xpose.msk.msra.mxu1 %vm1131_vm1, %v1130_v28 }
 0x184   :  { %v176_v38 = vpop.permute.xlu0 %175 }
 0x188   :  { %v180_v47 = vpop.permute.xlu0 %179 }
 0x189   :  { %1054 = vmatmul.mubr.msk.f32.vlgmr.msra.gmra.mrb[2].mxu0 %vm65_vm0, %v148_v29  ;;  %1057 = vmatmul.mubr.msk.f32.vlgmr.msra.gmra.mrb[0].mxu1 %vm65_vm0, %v150_v30 }
 0x18a   :  { %1059 = vmatprep.mubr.msk.f32.mxu1 %vm65_vm0, %v151_v31 }
 0x18c   :  { %v184_v59 = vpop.permute.xlu0 %183 }
 0x18d   :  { %1060 = vmatmul.mubr.msk.f32.gmra.mrb[2].mxu1 %vm65_vm0, %v152_v32 }
 0x18e   :  { %1062 = vmatprep.mubr.msk.f32.mxu1 %vm65_vm0, %v153_v33 }
 0x191   :  { %1063 = vmatmul.mubr.msk.f32.gmra.mrb[4].mxu1 %vm65_vm0, %v154_v34 }
 0x25c   :  { %v1055_v39 = vpop.f32.mrb[2].mxu0  ;;  %v1058_v40 = vpop.f32.mrb[0].mxu1 }
 0x25d   :  { %v293_v41 = vadd.f32 %v1055_v39, %v172_v35  ;;  %v287_v42 = vpop.f32.mrb[3].mxu0  ;;  %v297_v43 = vpop.f32.mrb[1].mxu1  ;;  %v303_v49 = vadd.f32 %v1058_v40, %v176_v38 }
 0x25e   :  { %v288_v44 = vadd.f32 %v287_v42, %v170_v36  ;;  %v298_v46 = vadd.f32 %v297_v43, %v174_v37 }
 0x25f   :  { %v330_v48 = vsel %vm326_vm2, %v293_v41, -inf  ;;  %v336_v58 = vsel %vm326_vm2, %v303_v49, -inf }
 0x260   :  { %v1061_v50 = vpop.f32.mrb[2].mxu1  ;;  %331 = vmax.xlane.f32.xlu0 %v330_v48  ;;  %v327_v51 = vsel %vm326_vm2, %v288_v44, -inf  ;;  %v333_v54 = vsel %vm326_vm2, %v298_v46, -inf }
 0x261   :  { %v307_v52 = vpop.f32.mrb[3].mxu1  ;;  %328 = vmax.xlane.f32.xlu1 %v327_v51  ;;  %v313_v55 = vadd.f32 %v1061_v50, %v180_v47 }
 0x262   :  { %v308_v53 = vadd.f32 %v307_v52, %v178_v45 }
 0x263   :  { %v342_v4 = vsel %vm326_vm2, %v313_v55, -inf }
 0x264   :  { %v1064_v56 = vpop.f32.mrb[4].mxu1  ;;  %334 = vmax.xlane.f32.xlu0 %v333_v54  ;;  %v339_v62 = vsel %vm326_vm2, %v308_v53, -inf }
 0x265   :  { %v317_v60 = vpop.f32.mrb[5].mxu1  ;;  %337 = vmax.xlane.f32.xlu1 %v336_v58  ;;  %v323_v63 = vadd.f32 %v1064_v56, %v184_v59 }
 0x266   :  { %v318_v61 = vadd.f32 %v317_v60, %v182_v57  ;;  %v1198_v60 = vpack.i.bf16 %v1399_v5, %v1393_v2 }
 0x267   :  { %v348_v14 = vsel %vm326_vm2, %v323_v63, -inf }
 0x268   :  { %340 = vmax.xlane.f32.xlu0 %v339_v62  ;;  %v345_v7 = vsel %vm326_vm2, %v318_v61, -inf }
 0x269   :  { %343 = vmax.xlane.f32.xlu1 %v342_v4 }
 0x26c   :  { %346 = vmax.xlane.f32.xlu0 %v345_v7 }
 0x26d   :  { %349 = vmax.xlane.f32.xlu1 %v348_v14 }
 0x2ed   :  { %v332_v15 = vpop.xlane.xlu0 %331 }
 0x2ee   :  { %v352_v16 = vsub.f32 %v293_v41, %v332_v15  ;;  %v329_v18 = vpop.xlane.xlu1 %328 }
 0x2ef   :  { %v351_v20 = vsub.f32 %v288_v44, %v329_v18 }
 0x2f0   :  { %v361_v21 = vmul.f32 1.442695, %v352_v16 }
 0x2f1   :  { %v359_v25 = vmul.f32 1.442695, %v351_v20  ;;  %v335_v26 = vpop.xlane.xlu0 %334 }
 0x2f2   :  { %1223 = vpow2.f32 %v361_v21  ;;  %v353_v27 = vsub.f32 %v298_v46, %v335_v26  ;;  %v338_v28 = vpop.xlane.xlu1 %337 }
 0x2f3   :  { %1225 = vpow2.f32 %v359_v25  ;;  %v354_v29 = vsub.f32 %v303_v49, %v338_v28 }
 0x2f4   :  { %v363_v30 = vmul.f32 1.442695, %v353_v27 }
 0x2f5   :  { %v365_v31 = vmul.f32 1.442695, %v354_v29  ;;  %v341_v32 = vpop.xlane.xlu0 %340 }
 0x2f6   :  { %1227 = vpow2.f32 %v363_v30  ;;  %v355_v33 = vsub.f32 %v308_v53, %v341_v32  ;;  %v344_v34 = vpop.xlane.xlu1 %343 }
 0x2f7   :  { %1229 = vpow2.f32 %v365_v31  ;;  %v356_v35 = vsub.f32 %v313_v55, %v344_v34 }
 0x2f8   :  { %v367_v36 = vmul.f32 1.442695, %v355_v33 }
 0x2f9   :  { %v369_v37 = vmul.f32 1.442695, %v356_v35  ;;  %v347_v38 = vpop.xlane.xlu0 %346 }
 0x2fa   :  { %1231 = vpow2.f32 %v367_v36  ;;  %v357_v39 = vsub.f32 %v318_v61, %v347_v38  ;;  %v350_v40 = vpop.xlane.xlu1 %349 }
 0x2fb   :  { %1233 = vpow2.f32 %v369_v37  ;;  %v358_v41 = vsub.f32 %v323_v63, %v350_v40 }
 0x2fc   :  { %v1224_v42 = vpop.eup %1223  ;;  %v371_v43 = vmul.f32 1.442695, %v357_v39 }
 0x2fd   :  { %v1226_v44 = vpop.eup %1225  ;;  %v373_v45 = vmul.f32 1.442695, %v358_v41  ;;  %v378_v46 = vsel %vm326_vm2, %v1224_v42, 0.0 }
 0x2fe   :  { %1235 = vpow2.f32 %v371_v43  ;;  %379 = vadd.xlane.f32.xlu1 %v378_v46  ;;  %v375_v47 = vsel %vm326_vm2, %v1226_v44, 0.0 }
 0x2ff   :  { %1237 = vpow2.f32 %v373_v45  ;;  %376 = vadd.xlane.f32.xlu0 %v375_v47 }
 0x300   :  { %v1228_v48 = vpop.eup %1227 }
 0x301   :  { %v1230_v49 = vpop.eup %1229  ;;  %v381_v50 = vsel %vm326_vm2, %v1228_v48, 0.0 }
 0x302   :  { %v384_v51 = vsel %vm326_vm2, %v1230_v49, 0.0 }
 0x303   :  { %382 = vadd.xlane.f32.xlu0 %v381_v50  ;;  %385 = vadd.xlane.f32.xlu1 %v384_v51 }
 0x304   :  { %v1232_v52 = vpop.eup %1231 }
 0x305   :  { %v1234_v53 = vpop.eup %1233  ;;  %v387_v54 = vsel %vm326_vm2, %v1232_v52, 0.0 }
 0x306   :  { %v390_v55 = vsel %vm326_vm2, %v1234_v53, 0.0 }
 0x307   :  { %388 = vadd.xlane.f32.xlu0 %v387_v54  ;;  %391 = vadd.xlane.f32.xlu1 %v390_v55 }
 0x308   :  { %v1236_v56 = vpop.eup %1235 }
 0x309   :  { %v1238_v57 = vpop.eup %1237  ;;  %v393_v58 = vsel %vm326_vm2, %v1236_v56, 0.0 }
 0x30a   :  { %v396_v59 = vsel %vm326_vm2, %v1238_v57, 0.0 }
 0x30b   :  { %394 = vadd.xlane.f32.xlu0 %v393_v58  ;;  %397 = vadd.xlane.f32.xlu1 %v396_v59 }
 0x31c   :  { %1194 = vrot.lane.b32.xlu1 %v1193_v3, %s1341_s7 }
 0x320   :  { %1199 = vrot.lane.b32.xlu1 %v1198_v60, %s1341_s7 }
 0x321   :  { %1189 = vrot.lane.b32.xlu0 %v1433_v19, %s1340_s6 }
 0x325   :  { %581 = vrot.lane.b32.xlu0 %v1427_v13, %s1341_s7 }
 0x38b   :  { %v380_v62 = vpop.xlane.xlu1 %379 }
 0x38c   :  { %v377_v61 = vpop.xlane.xlu0 %376 }
 0x38d   :  { %1239 = vrcp.f32 %v377_v61 }
 0x38e   :  { %1241 = vrcp.f32 %v380_v62 }
 0x390   :  { %v383_v63 = vpop.xlane.xlu0 %382  ;;  %v386_v4 = vpop.xlane.xlu1 %385 }
 0x391   :  { %1243 = vrcp.f32 %v383_v63 }
 0x392   :  { %1245 = vrcp.f32 %v386_v4 }
 0x394   :  { %v389_v7 = vpop.xlane.xlu0 %388  ;;  %v392_v16 = vpop.xlane.xlu1 %391 }
 0x395   :  { %1247 = vrcp.f32 %v389_v7 }
 0x396   :  { %1249 = vrcp.f32 %v392_v16 }
 0x397   :  { %v1240_v14 = vpop.eup %1239 }
 0x398   :  { %v395_v19 = vpop.xlane.xlu0 %394  ;;  %v407_v15 = vmul.f32 %v1240_v14, %v1226_v44  ;;  %v398_v3 = vpop.xlane.xlu1 %397 }
 0x399   :  { %1251 = vrcp.f32 %v395_v19  ;;  %v1242_v13 = vpop.eup %1241 }
 0x39a   :  { %1069 = vmatprep.mubr.msk.f32.mxu0 %vm326_vm2, %v407_v15  ;;  %1253 = vrcp.f32 %v398_v3  ;;  %v408_v20 = vmul.f32 %v1242_v13, %v1224_v42 }
 0x39b   :  { %v1244_v18 = vpop.eup %1243 }
 0x39c   :  { %v1190_v0 = vpop.permute.xlu0 %1189  ;;  %v1246_v21 = vpop.eup %1245  ;;  %v409_v25 = vmul.f32 %v1244_v18, %v1228_v48 }
 0x39d   :  { %v1192_v1 = vunpack.i.h.bf16 %v1190_v0  ;;  %v1191_v2 = vunpack.i.l.bf16 %v1190_v0  ;;  %v410_v27 = vmul.f32 %v1246_v21, %v1230_v49  ;;  %v1195_v35 = vpop.permute.xlu1 %1194 }
 0x39e   :  { %v1197_v36 = vunpack.i.h.bf16 %v1195_v35  ;;  %v1196_v37 = vunpack.i.l.bf16 %v1195_v35  ;;  %v1203_v35 = vpack.i.bf16 %v1411_v9, %v1430_v17 }
 0x39f   :  { %v1136_v5 = vpack.c.bf16 %v1192_v1, %v1191_v2  ;;  %v1248_v26 = vpop.eup %1247 }
 0x3a0   :  { %v1250_v28 = vpop.eup %1249  ;;  %v411_v29 = vmul.f32 %v1248_v26, %v1232_v52  ;;  %v1140_v38 = vpack.c.bf16 %v1197_v36, %v1196_v37  ;;  %v582_v7 = vpop.permute.xlu0 %581  ;;  %v1213_v36 = vpack.i.bf16 %v1447_v23, %v1419_v11  ;;  %v1208_v37 = vpack.i.bf16 %v1443_v22, %v1415_v10 }
 0x3a1   :  { %1137 = vmatprep.subr.bf16.mxu0 %v1136_v5  ;;  %v412_v31 = vmul.f32 %v1250_v28, %v1234_v53  ;;  %v1200_v39 = vpop.permute.xlu1 %1199 }
 0x3a2   :  { %1139 = vmatpush3.bf16.msra.mxu0 %v1136_v5  ;;  %1141 = vmatprep.subr.bf16.mxu1 %v1140_v38  ;;  %v1202_v40 = vunpack.i.h.bf16 %v1200_v39  ;;  %v1201_v41 = vunpack.i.l.bf16 %v1200_v39 }
 0x3a3   :  { %v1252_v30 = vpop.eup %1251  ;;  %1143 = vmatpush3.bf16.msra.mxu1 %v1140_v38  ;;  %v1218_v38 = vpack.i.bf16 %v1451_v24, %v1423_v12 }
 0x3a4   :  { %v1254_v32 = vpop.eup %1253  ;;  %v413_v33 = vmul.f32 %v1252_v30, %v1236_v56  ;;  %v1144_v42 = vpack.c.bf16 %v1202_v40, %v1201_v41  ;;  %v48_v30 = vld [vmem:[#allocation5 + $0x30] sm:$0xff] }
 0x3a5   :  { %1070 = vmatmul.mubr.msk.f32.vlgmr.msra.gmra.mrb[4].mxu0 %vm326_vm2, %v408_v20  ;;  %v414_v34 = vmul.f32 %v1254_v32, %v1238_v57 }
 0x3a6   :  { %1072 = vmatprep.mubr.msk.f32.mxu0 %vm326_vm2, %v409_v25  ;;  %1145 = vmatprep.subr.bf16.mxu1 %v1144_v42 }
 0x3a7   :  { %1147 = vmatpush3.bf16.msra.mxu1 %v1144_v42 }
 0x3a9   :  { %1073 = vmatmul.mubr.msk.f32.gmra.mrb[6].mxu0 %vm326_vm2, %v410_v27 }
 0x3aa   :  { %1075 = vmatprep.mubr.msk.f32.mxu0 %vm326_vm2, %v411_v29  ;;  %v47_v29 = vld [vmem:[#allocation5 + $0x28] sm:$0xff] }
 0x3ad   :  { %1076 = vmatmul.mubr.msk.f32.gmra.mrb[8].mxu0 %vm326_vm2, %v412_v31  ;;  %v984_v31 = vld [vmem:[#allocation5 + $0x41] ss:$0 sm:$0xff] }
 0x3ae   :  { %1078 = vmatprep.mubr.msk.f32.mxu0 %vm326_vm2, %v413_v33  ;;  %v49_v33 = vld [vmem:[#allocation5 + $0x38] sm:$0xff] }
 0x3b1   :  { %1079 = vmatmul.mubr.msk.f32.gmra.mrb[10].mxu0 %vm326_vm2, %v414_v34  ;;  %v1152_v34 = vpack.c.bf16 %v49_v33, %v48_v30 }
 0x478   :  { %v1071_v43 = vpop.f32.mrb[4].mxu0 }
 0x479   :  { %v511_v44 = vpop.f32.mrb[5].mxu0  ;;  %v551_v46 = vmul.f32 %v1071_v43, %v1411_v9 }
 0x47a   :  { %v550_v49 = vmul.f32 %v511_v44, %v1430_v17 }
 0x47c   :  { %v1074_v45 = vpop.f32.mrb[6].mxu0 }
 0x47d   :  { %v553_v47 = vmul.f32 %v1074_v45, %v1443_v22  ;;  %v521_v48 = vpop.f32.mrb[7].mxu0 }
 0x47e   :  { %v552_v50 = vmul.f32 %v521_v48, %v1415_v10 }
 0x47f   :  { %v559_v51 = vadd.f32 %v553_v47, %v551_v46 }
 0x480   :  { %v558_v52 = vadd.f32 %v552_v50, %v550_v49  ;;  %v1077_v53 = vpop.f32.mrb[8].mxu0 }
 0x481   :  { %v555_v54 = vmul.f32 %v1077_v53, %v1447_v23  ;;  %v531_v55 = vpop.f32.mrb[9].mxu0 }
 0x482   :  { %v554_v56 = vmul.f32 %v531_v55, %v1419_v11 }
 0x483   :  { %v561_v57 = vadd.f32 %v559_v51, %v555_v54 }
 0x484   :  { %v560_v58 = vadd.f32 %v558_v52, %v554_v56  ;;  %v1080_v59 = vpop.f32.mrb[10].mxu0 }
 0x485   :  { %v557_v60 = vmul.f32 %v1080_v59, %v1451_v24  ;;  %v541_v61 = vpop.f32.mrb[11].mxu0 }
 0x486   :  { %v556_v62 = vmul.f32 %v541_v61, %v1423_v12 }
 0x487   :  { %v563_v63 = vadd.f32 %v561_v57, %v557_v60 }
 0x488   :  { %v562_v4 = vadd.f32 %v560_v58, %v556_v62 }
 0x48a   :  { %1089 = vmatprep.mubr.msk.f32.mxu1 %vm65_vm0, %v562_v4 }
 0x48b   :  { %1090 = vmatmul.mubr.msk.f32.vlgmr.msra.gmra.mrb[6].mxu1 %vm65_vm0, %v563_v63 }
 0x55e   :  { %v1091_v14 = vpop.f32.mrb[6].mxu1 }
 0x55f   :  { %v662_v19 = vadd.f32 %v1091_v14, %v582_v7  ;;  %v656_v15 = vpop.f32.mrb[7].mxu1 }
 0x560   :  { %v657_v16 = vadd.f32 %v656_v15, %v582_v7 }
 0x561   :  { %v666_v0 = vadd.f32 %v662_v19, %v1407_v8 }
 0x562   :  { %v665_v1 = vadd.f32 %v657_v16, %v1401_v6  ;;  %v46_v6 = vld [vmem:[#allocation5 + $0x20] sm:$0xff] }
 0x563   :  { %v670_v2 = vsel %vm65_vm0, %v666_v0, 0.0  ;;  %v1148_v32 = vpack.c.bf16 %v47_v29, %v46_v6  ;;  %v987_v16 = vld [vmem:[#allocation5 + $0x42] ss:$0 sm:$0xff] }
 0x564   :  { %671 = vadd.xlane.f32.xlu0 %v670_v2  ;;  %v667_v3 = vsel %vm65_vm0, %v665_v1, 0.0 }
 0x565   :  { %668 = vadd.xlane.f32.xlu1 %v667_v3  ;;  %1149 = vmatprep.subr.bf16.mxu0 %v1148_v32 }
 0x566   :  { %1151 = vmatpush3.bf16.msra.mxu0 %v1148_v32 }
 0x567   :  { %1153 = vmatprep.subr.bf16.mxu0 %v1152_v34 }
 0x56a   :  { %1155 = vmatpush3.bf16.msra.mxu0 %v1152_v34 }
 0x5f1   :  { %v672_v5 = vpop.xlane.xlu0 %671 }
 0x5f2   :  { %v675_v13 = vmul.f32 0.03125, %v672_v5  ;;  %v669_v18 = vpop.xlane.xlu1 %668 }
 0x5f3   :  { %v674_v20 = vmul.f32 0.03125, %v669_v18 }
 0x5f4   :  { %v677_v21 = vsub.f32 %v666_v0, %v675_v13 }
 0x5f5   :  { %v676_v25 = vsub.f32 %v665_v1, %v674_v20 }
 0x5f6   :  { %v679_v26 = vmul.f32 %v677_v21, %v677_v21 }
 0x5f7   :  { %v678_v27 = vmul.f32 %v676_v25, %v676_v25 }
 0x5f8   :  { %v683_v28 = vsel %vm65_vm0, %v679_v26, 0.0 }
 0x5f9   :  { %684 = vadd.xlane.f32.xlu1 %v683_v28  ;;  %v680_v8 = vsel %vm65_vm0, %v678_v27, 0.0 }
 0x5fa   :  { %681 = vadd.xlane.f32.xlu0 %v680_v8 }
 0x60a   :  { %1204 = vrot.lane.b32.xlu1 %v1203_v35, %s1342_s8 }
 0x60e   :  { %1209 = vrot.lane.b32.xlu1 %v1208_v37, %s1342_s8 }
 0x610   :  { %701 = vrot.lane.b32.xlu0 %v984_v31, %s1339_s1 }
 0x612   :  { %1219 = vrot.lane.b32.xlu1 %v1218_v38, %s1342_s8 }
 0x614   :  { %1214 = vrot.lane.b32.xlu0 %v1213_v36, %s1342_s8 }
 0x618   :  { %706 = vrot.lane.b32.xlu0 %v984_v31, %s1340_s6 }
 0x686   :  { %v685_v39 = vpop.xlane.xlu1 %684 }
 0x687   :  { %v687_v40 = vmul.f32 0.03125, %v685_v39  ;;  %v682_v41 = vpop.xlane.xlu0 %681 }
 0x688   :  { %v686_v9 = vmul.f32 0.03125, %v682_v41 }
 0x689   :  { %v689_v17 = vadd.f32 1e-05, %v687_v40 }
 0x68a   :  { %v688_v42 = vadd.f32 1e-05, %v686_v9  ;;  %v1205_v23 = vpop.permute.xlu1 %1204 }
 0x68b   :  { %1255 = vrsqrt.f32 %v689_v17  ;;  %v702_v11 = vpop.permute.xlu0 %701  ;;  %v1207_v10 = vunpack.i.h.bf16 %v1205_v23  ;;  %v1206_v22 = vunpack.i.l.bf16 %v1205_v23 }
 0x68c   :  { %1257 = vrsqrt.f32 %v688_v42 }
 0x68d   :  { %v1156_v45 = vpack.c.bf16 %v1207_v10, %v1206_v22 }
 0x68e   :  { %v1210_v48 = vpop.permute.xlu1 %1209 }
 0x68f   :  { %v1215_v43 = vpop.permute.xlu0 %1214  ;;  %v1212_v50 = vunpack.i.h.bf16 %v1210_v48  ;;  %v1211_v51 = vunpack.i.l.bf16 %v1210_v48  ;;  %1157 = vmatprep.subr.bf16.mxu1 %v1156_v45 }
 0x690   :  { %v1217_v46 = vunpack.i.h.bf16 %v1215_v43  ;;  %v1216_v12 = vunpack.i.l.bf16 %v1215_v43  ;;  %1159 = vmatpush3.bf16.msra.mxu1 %v1156_v45 }
 0x691   :  { %v1160_v54 = vpack.c.bf16 %v1212_v50, %v1211_v51 }
 0x692   :  { %v1164_v55 = vpack.c.bf16 %v1217_v46, %v1216_v12  ;;  %v1220_v56 = vpop.permute.xlu1 %1219 }
 0x693   :  { %1161 = vmatprep.subr.bf16.mxu1 %v1160_v54  ;;  %v1222_v58 = vunpack.i.h.bf16 %v1220_v56  ;;  %v1221_v59 = vunpack.i.l.bf16 %v1220_v56  ;;  %v707_v62 = vpop.permute.xlu0 %706 }
 0x694   :  { %1163 = vmatpush3.bf16.msra.mxu1 %v1160_v54 }
 0x695   :  { %v1256_v44 = vpop.eup %1255  ;;  %v1168_v61 = vpack.c.bf16 %v1222_v58, %v1221_v59  ;;  %1165 = vmatprep.subr.bf16.mxu1 %v1164_v55 }
 0x696   :  { %v1258_v24 = vpop.eup %1257  ;;  %v693_v47 = vmul.f32 %v1256_v44, %v677_v21 }
 0x697   :  { %v692_v49 = vmul.f32 %v1258_v24, %v676_v25 }
 0x698   :  { %v699_v52 = vmul.f32 %v984_v31, %v693_v47  ;;  %1167 = vmatpush3.bf16.msra.mxu1 %v1164_v55 }
 0x699   :  { %v698_v53 = vmul.f32 %v984_v31, %v692_v49  ;;  %1169 = vmatprep.subr.bf16.mxu1 %v1168_v61 }
 0x69a   :  { %v705_v60 = vadd.f32 %v702_v11, %v699_v52 }
 0x69b   :  { %v704_v57 = vadd.f32 %v702_v11, %v698_v53 }
 0x69c   :  { %1171 = vmatpush3.bf16.msra.mxu1 %v1168_v61 }
 0x69d   :  { %1100 = vmatprep.mubr.msk.f32.mxu0 %vm65_vm0, %v704_v57 }
 0x69e   :  { %1101 = vmatmul.mubr.msk.f32.vlgmr.msra.gmra.mrb[12].mxu0 %vm65_vm0, %v705_v60 }
 0x771   :  { %v1102_v63 = vpop.f32.mrb[12].mxu0 }
 0x772   :  { %v787_v4 = vadd.f32 %v1102_v63, %v707_v62  ;;  %v781_v7 = vpop.f32.mrb[13].mxu0 }
 0x773   :  { %v782_v14 = vadd.f32 %v781_v7, %v707_v62 }
 0x774   :  { %v791_v15 = vmax.f32 %v787_v4, 0.0 }
 0x775   :  { %v790_v19 = vmax.f32 %v782_v14, 0.0 }
 0x777   :  { %1119 = vmatprep.mubr.msk.f32.mxu1 %vm820_vm3, %v790_v19 }
 0x778   :  { %1120 = vmatmul.mubr.msk.f32.vlgmr.msra.gmra.mrb[8].mxu1 %vm820_vm3, %v791_v15 }
 0x84b   :  { %v1121_v0 = vpop.f32.mrb[8].mxu1 }
 0x84c   :  { %v899_v1 = vadd.f32 %v1121_v0, %v987_v16  ;;  %v893_v2 = vpop.f32.mrb[9].mxu1 }
 0x84d   :  { %v894_v3 = vadd.f32 %v987_v16, %v893_v2 }
 0x84e   :  { %v903_v5 = vadd.f32 %v899_v1, %v705_v60 }
 0x84f   :  { %v902_v13 = vadd.f32 %v894_v3, %v704_v57 }
 0x850   :  { %v907_v18 = vsel %vm65_vm0, %v903_v5, 0.0 }
 0x851   :  { %908 = vadd.xlane.f32.xlu0 %v907_v18  ;;  %v904_v20 = vsel %vm65_vm0, %v902_v13, 0.0 }
 0x852   :  { %905 = vadd.xlane.f32.xlu1 %v904_v20 }
 0x8de   :  { %v909_v21 = vpop.xlane.xlu0 %908 }
 0x8df   :  { %v911_v25 = vmul.f32 0.03125, %v909_v21  ;;  %v906_v26 = vpop.xlane.xlu1 %905 }
 0x8e0   :  { %v910_v27 = vmul.f32 0.03125, %v906_v26 }
 0x8e1   :  { %v913_v28 = vsub.f32 %v903_v5, %v911_v25 }
 0x8e2   :  { %v912_v8 = vsub.f32 %v902_v13, %v910_v27 }
 0x8e3   :  { %v915_v6 = vmul.f32 %v913_v28, %v913_v28 }
 0x8e4   :  { %v914_v29 = vmul.f32 %v912_v8, %v912_v8 }
 0x8e5   :  { %v919_v30 = vsel %vm65_vm0, %v915_v6, 0.0 }
 0x8e6   :  { %920 = vadd.xlane.f32.xlu1 %v919_v30  ;;  %v916_v31 = vsel %vm65_vm0, %v914_v29, 0.0 }
 0x8e7   :  { %917 = vadd.xlane.f32.xlu0 %v916_v31 }
 0x8f7   :  { %936 = vrot.lane.b32.xlu1 %v987_v16, %s1340_s6 }
 0x8fd   :  { %931 = vrot.lane.b32.xlu0 %v987_v16, %s1339_s1 }
 0x973   :  { %v921_v32 = vpop.xlane.xlu1 %920 }
 0x974   :  { %v923_v33 = vmul.f32 0.03125, %v921_v32  ;;  %v918_v34 = vpop.xlane.xlu0 %917 }
 0x975   :  { %v922_v35 = vmul.f32 0.03125, %v918_v34 }
 0x976   :  { %v925_v36 = vadd.f32 1e-05, %v923_v33 }
 0x977   :  { %v924_v37 = vadd.f32 1e-05, %v922_v35  ;;  %v937_v17 = vpop.permute.xlu1 %936 }
 0x978   :  { %1259 = vrsqrt.f32 %v925_v36  ;;  %v932_v39 = vpop.permute.xlu0 %931 }
 0x979   :  { %1261 = vrsqrt.f32 %v924_v37 }
 0x982   :  { %v1260_v38 = vpop.eup %1259 }
 0x983   :  { %v1262_v40 = vpop.eup %1261  ;;  %v929_v41 = vmul.f32 %v1260_v38, %v913_v28 }
 0x984   :  { %v928_v9 = vmul.f32 %v1262_v40, %v912_v8 }
 0x985   :  { %v935_v42 = vmul.f32 %v932_v39, %v929_v41 }
 0x986   :  { %v934_v11 = vmul.f32 %v932_v39, %v928_v9 }
 0x987   :  { %v940_v23 = vadd.f32 %v937_v17, %v935_v42 }
 0x988   :  { %v939_v43 = vadd.f32 %v937_v17, %v934_v11 }
 0x989   :  { %942 = vst.msk [vmem:[#allocation7 + $0x8] sm:$0xff] %vm65_vm0, %v940_v23 }
 0x98a   :  { %941 = vst.msk [vmem:[#allocation7] sm:$0xff] %vm65_vm0, %v939_v43 }
 0x98b   :  { %1318 = shalt.err (!%p1315_p6)
}
 0x98c   :  { %s1319_s14 = scalar_lea.hbm %s1554_s2, 256 }
 0x98d   :  { %p1320_p7 = scmp.ne.s32.totalorder %s1554_s2, %s1319_s14  ;;  %p1323_p8 = scmp.lt.u32.totalorder %s1319_s14, %s1554_s2 }
 0x98f   :  { %p1325_p9 = pnand %p1323_p8, %p1320_p7 }
 0x991   :  { %1328 = shalt.err (!%p1325_p9)
}
 0x992   :  { %954 = dma.vmem_to_hbm [thread:$0]  %s949_s10, 256, %s1554_s2, [#allocation4], %s1336_s19, %s1336_s19, %s1337_s20  }
 0x993   :  { %1333 = dma.done.wait [#allocation4], 256  }
 0x994   :  { %1334 = vsyncadd [#allocation4], 4294967040 }
 0x995   :  { %958 = vsyncpa [#allocation3], 1 }
 0x996   :  { %959 = vsyncpa [#allocation6], 1 }
 0x997   :  { %960 = vsyncpa [#allocation4], 1 }

</bundles_post_ra>
